<compile_context>
chip_gen: v6e
topology: v6e:2x2x1
jax: 0.10.0
libtpu: 0.0.40
codegen_flags: <defaults>
</compile_context>

<pallas_src>
import functools
import jax
import jax.numpy as jnp
from jax.experimental import pallas as pl
from jax.experimental.pallas import tpu as pltpu

NC = 3
NDF = 64
LEAKY_SLOPE = 0.2
BN_EPS = 1e-5

_VMEM_LIMIT = 32 << 20  # ~9 MiB actually needed; leave headroom on v7x (64 MiB VMEM)


def _leaky(x):
    return jnp.where(x >= 0, x, LEAKY_SLOPE * x)


# --------------------------- Pallas kernels ---------------------------------

def _matmul_leaky_kernel(a_ref, b_ref, o_ref):
    # One (tm, K) x (K, N) matmul on the MXU with fused LeakyReLU.
    acc = jnp.dot(a_ref[...], b_ref[...], preferred_element_type=jnp.float32)
    o_ref[...] = _leaky(acc)


def conv_leaky(a, b, tm):
    """a: [M, K] bf16, b: [K, N] bf16 -> leaky(a @ b) as [M, N] f32 (M % tm == 0)."""
    M, K = a.shape
    _, N = b.shape
    return pl.pallas_call(
        _matmul_leaky_kernel,
        out_shape=jax.ShapeDtypeStruct((M, N), jnp.float32),
        grid_spec=pltpu.PrefetchScalarGridSpec(
            num_scalar_prefetch=0,
            grid=(M // tm,),
            in_specs=[pl.BlockSpec((tm, K), lambda i: (i, 0)),
                      pl.BlockSpec((K, N), lambda i: (0, 0))],
            out_specs=pl.BlockSpec((tm, N), lambda i: (i, 0)),
        ),
        compiler_params=pltpu.CompilerParams(
            dimension_semantics=("parallel",),
            vmem_limit_bytes=_VMEM_LIMIT),
    )(a, b)


def _conv_bn_leaky_kernel(a_ref, b_ref, g_ref, bt_ref, o_ref, *, count):
    # conv matmul + train-mode BatchNorm (batch stats, biased variance) + LeakyReLU,
    # all in one grid step: the whole [M, C] output is resident in VMEM.
    y = jnp.dot(a_ref[...], b_ref[...], preferred_element_type=jnp.float32)
    inv_n = 1.0 / count
    mean = jnp.sum(y, axis=0, keepdims=True) * inv_n
    var = jnp.sum(y * y, axis=0, keepdims=True) * inv_n - mean * mean
    scale = g_ref[...] * jax.lax.rsqrt(var + BN_EPS)   # precomputed once per channel
    shift = bt_ref[...] - mean * scale
    o_ref[...] = _leaky(y * scale + shift)


def conv_bn_leaky(a, b, gamma, beta):
    """Fused conv(matmul) + train-mode BN + LeakyReLU. a:[M,K] bf16, b:[K,N] bf16."""
    M, K = a.shape
    _, N = b.shape
    g = gamma.reshape(1, N).astype(jnp.float32)
    bt = beta.reshape(1, N).astype(jnp.float32)
    return pl.pallas_call(
        functools.partial(_conv_bn_leaky_kernel, count=float(M)),
        out_shape=jax.ShapeDtypeStruct((M, N), jnp.float32),
        grid_spec=pltpu.PrefetchScalarGridSpec(
            num_scalar_prefetch=0,
            grid=(1,),
            in_specs=[pl.BlockSpec((M, K), lambda i: (0, 0)),
                      pl.BlockSpec((K, N), lambda i: (0, 0)),
                      pl.BlockSpec((1, N), lambda i: (0, 0)),
                      pl.BlockSpec((1, N), lambda i: (0, 0))],
            out_specs=pl.BlockSpec((M, N), lambda i: (0, 0)),
        ),
        compiler_params=pltpu.CompilerParams(
            dimension_semantics=("arbitrary",),
            vmem_limit_bytes=_VMEM_LIMIT),
    )(a, b, g, bt)


def _conv_bn_leaky_final_kernel(a_ref, b_ref, g_ref, bt_ref, w5_ref,
                                o_ref, head_ref, *, count, batch, rows_per_img):
    # Layer 4: conv + BN + LeakyReLU, plus the fused conv_out(4x4, Cout=1) + Sigmoid
    # head. Each image's 4x4xC activation reduces against the host-tiled weight.
    y = jnp.dot(a_ref[...], b_ref[...], preferred_element_type=jnp.float32)
    inv_n = 1.0 / count
    mean = jnp.sum(y, axis=0, keepdims=True) * inv_n
    var = jnp.sum(y * y, axis=0, keepdims=True) * inv_n - mean * mean
    scale = g_ref[...] * jax.lax.rsqrt(var + BN_EPS)
    shift = bt_ref[...] - mean * scale
    z = _leaky(y * scale + shift)
    o_ref[...] = z

    p = z * w5_ref[...]                                  # [batch*rows, C]
    row = jnp.sum(p, axis=1, keepdims=True)              # [batch*rows, 1]
    per_img = [jnp.sum(row[n * rows_per_img:(n + 1) * rows_per_img, :],
                       axis=0, keepdims=True)
               for n in range(batch)]                    # each [1, 1]
    logits = jnp.concatenate(per_img, axis=0)            # [batch, 1]
    head_ref[...] = pl.reciprocal(1.0 + jnp.exp(-logits), approx=True)


def conv_bn_leaky_with_head(a, b, gamma, beta, w5_tiled, batch):
    M, K = a.shape
    _, N = b.shape
    rows = M // batch
    g = gamma.reshape(1, N).astype(jnp.float32)
    bt = beta.reshape(1, N).astype(jnp.float32)
    return pl.pallas_call(
        functools.partial(_conv_bn_leaky_final_kernel, count=float(M),
                          batch=batch, rows_per_img=rows),
        out_shape=(jax.ShapeDtypeStruct((M, N), jnp.float32),
                   jax.ShapeDtypeStruct((batch, 1), jnp.float32)),
        grid_spec=pltpu.PrefetchScalarGridSpec(
            num_scalar_prefetch=0,
            grid=(1,),
            in_specs=[pl.BlockSpec((M, K), lambda i: (0, 0)),
                      pl.BlockSpec((K, N), lambda i: (0, 0)),
                      pl.BlockSpec((1, N), lambda i: (0, 0)),
                      pl.BlockSpec((1, N), lambda i: (0, 0)),
                      pl.BlockSpec((M, N), lambda i: (0, 0))],
            out_specs=(pl.BlockSpec((M, N), lambda i: (0, 0)),
                       pl.BlockSpec((batch, 1), lambda i: (0, 0))),
        ),
        compiler_params=pltpu.CompilerParams(
            dimension_semantics=("arbitrary",),
            vmem_limit_bytes=_VMEM_LIMIT),
    )(a, b, g, bt, w5_tiled)


# --------------------------- host-side glue ---------------------------------

def im2col(x_nhwc, kh, kw, stride, pad):
    """Extract conv patches -> [N*Ho*Wo, kh*kw*C] (ordering matches weight reshape)."""
    if pad:
        x_nhwc = jnp.pad(x_nhwc, ((0, 0), (pad, pad), (pad, pad), (0, 0)))
    N, H, W, C = x_nhwc.shape
    Ho = (H - kh) // stride + 1
    Wo = (W - kw) // stride + 1
    cols = []
    for i in range(kh):
        for j in range(kw):
            cols.append(x_nhwc[:, i:i + stride * Ho:stride, j:j + stride * Wo:stride, :])
    patches = jnp.stack(cols, axis=3)                 # [N, Ho, Wo, kh*kw, C]
    return patches.reshape(N * Ho * Wo, kh * kw * C), (N, Ho, Wo)


def _w_mat(w_oihw):
    # OIHW -> (kh, kw, Cin, Cout) -> [kh*kw*Cin, Cout]  (matches patch flattening)
    cout, cin, kh, kw = w_oihw.shape
    return jnp.transpose(w_oihw, (2, 3, 1, 0)).reshape(kh * kw * cin, cout)


def _pick_tm(M):
    # Prefer ~512-row tiles so layer 1 runs in a few "parallel" grid steps
    # (keeps both v7x TensorCores busy); otherwise take the whole M in one step.
    for t in (512, 256, 128):
        if M % t == 0 and M > t:
            return t
    return M


def discriminator_forward(x_nchw, params):
    x = jnp.transpose(x_nchw, (0, 2, 3, 1))           # NCHW -> NHWC
    batch = x.shape[0]
    bf16 = jnp.bfloat16

    # Layer 1: conv(6x6, s2, p0, bias=False) + LeakyReLU(0.2)
    p1, (n, h1, w1) = im2col(x, 6, 6, 2, 0)
    y1 = conv_leaky(p1.astype(bf16), _w_mat(params["w1"]).astype(bf16),
                    _pick_tm(p1.shape[0]))
    x1 = y1.reshape(n, h1, w1, -1)

    # Layers 2-3: conv(4x4, s2, p1) + BatchNorm(train stats) + LeakyReLU, fused
    p2, (n, h2, w2) = im2col(x1, 4, 4, 2, 1)
    y2 = conv_bn_leaky(p2.astype(bf16), _w_mat(params["w2"]).astype(bf16),
                       params["g1"], params["b1"])
    x2 = y2.reshape(n, h2, w2, -1)

    p3, (n, h3, w3) = im2col(x2, 4, 4, 2, 1)
    y3 = conv_bn_leaky(p3.astype(bf16), _w_mat(params["w3"]).astype(bf16),
                       params["g2"], params["b2"])
    x3 = y3.reshape(n, h3, w3, -1)

    # Layer 4 (conv + BN + LeakyReLU) fused with conv_out(4x4, s1, Cout=1) + Sigmoid
    p4, (n, h4, w4) = im2col(x3, 4, 4, 2, 1)
    assert h4 == 4 and w4 == 4, "fused conv_out head assumes a 4x4 layer-4 feature map"
    w5_rows = jnp.transpose(params["w_out"], (2, 3, 1, 0)).reshape(16, NDF * 8)
    w5_tiled = jnp.tile(w5_rows, (batch, 1)).astype(jnp.float32)   # [batch*16, C]
    y4, out5 = conv_bn_leaky_with_head(
        p4.astype(bf16), _w_mat(params["w4"]).astype(bf16),
        params["g3"], params["b3"], w5_tiled, batch)
    x4 = y4.reshape(n, h4, w4, -1)

    out = out5.reshape(batch, 1, 1, 1)                # NCHW == NHWC for 1x1x1

    to_nchw = lambda t: jnp.transpose(t, (0, 3, 1, 2))
    intermediate_rep = [to_nchw(x1), to_nchw(x2), to_nchw(x3), to_nchw(x4)]
    # TODO(synk): BatchNorm running-stat updates (stateful training bookkeeping) are
    # not modeled; normalization itself uses batch statistics exactly as train-mode BN.
    return out, intermediate_rep


def init_params(key):
    ks = jax.random.split(key, 5)

    def conv_w(k, cout, cin, kh, kw):
        return jax.random.normal(k, (cout, cin, kh, kw), jnp.float32) * 0.02

    return {
        "w1": conv_w(ks[0], NDF, NC, 6, 6),
        "w2": conv_w(ks[1], NDF * 2, NDF, 4, 4),
        "w3": conv_w(ks[2], NDF * 4, NDF * 2, 4, 4),
        "w4": conv_w(ks[3], NDF * 8, NDF * 4, 4, 4),
        "w_out": conv_w(ks[4], 1, NDF * 8, 4, 4),
        "g1": jnp.ones((NDF * 2,), jnp.float32), "b1": jnp.zeros((NDF * 2,), jnp.float32),
        "g2": jnp.ones((NDF * 4,), jnp.float32), "b2": jnp.zeros((NDF * 4,), jnp.float32),
        "g3": jnp.ones((NDF * 8,), jnp.float32), "b3": jnp.zeros((NDF * 8,), jnp.float32),
    }


if __name__ == "__main__":
    key = jax.random.PRNGKey(0)
    k_param, k_x = jax.random.split(key)
    params = init_params(k_param)

    # Smallest spatial size that survives all five convs: 68 -> 32 -> 16 -> 8 -> 4 -> 1
    x_img = jax.random.normal(k_x, (2, NC, 68, 68), jnp.float32)

    output, intermediate_rep = discriminator_forward(x_img, params)
    output = jax.block_until_ready(output)
    for t in intermediate_rep:
        jax.block_until_ready(t)

    assert output.shape == (2, 1, 1, 1)
    assert intermediate_rep[0].shape == (2, NDF, 32, 32)
    assert intermediate_rep[1].shape == (2, NDF * 2, 16, 16)
    assert intermediate_rep[2].shape == (2, NDF * 4, 8, 8)
    assert intermediate_rep[3].shape == (2, NDF * 8, 4, 4)
    print("KERNEL_OK")
</pallas_src>

<mosaic_0001>
module attributes {stable_mosaic.version = 11 : i64} {
  func.func @_matmul_leaky_kernel(%arg0: i32, %arg1: memref<512x108xbf16, #tpu.memory_space<vmem>>, %arg2: memref<108x64xbf16, #tpu.memory_space<vmem>>, %arg3: memref<512x64xf32, #tpu.memory_space<vmem>>) attributes {dimension_semantics = [#tpu.dimension_semantics<parallel>], iteration_bounds = array<i64: 4>, scalar_prefetch = 0 : i64, scratch_operands = 0 : i64, tpu.core_type = #tpu.core_type<tc>, window_params = [{transform_indices = @transform_0, window_bounds = array<i64: 512, 108>}, {pipeline_mode = #tpu.pipeline_mode<synchronous>, transform_indices = @transform_1, window_bounds = array<i64: 108, 64>}, {transform_indices = @transform_2, window_bounds = array<i64: 512, 64>}]} {
    %c0 = arith.constant 0 : index
    %c0_0 = arith.constant 0 : index
    %0 = vector.load %arg1[%c0, %c0_0] : memref<512x108xbf16, #tpu.memory_space<vmem>>, vector<512x108xbf16>
    %c0_1 = arith.constant 0 : index
    %c0_2 = arith.constant 0 : index
    %1 = vector.load %arg2[%c0_1, %c0_2] : memref<108x64xbf16, #tpu.memory_space<vmem>>, vector<108x64xbf16>
    %cst = arith.constant dense<0.000000e+00> : vector<512x64xf32>
    %2 = tpu.matmul %0, %1, %cst {dimension_numbers = #tpu.dot_dimension_numbers<[1], [0], [0], [1], [0, 0, 1, 1], [], []>} : vector<512x108xbf16>, vector<108x64xbf16>, vector<512x64xf32> -> vector<512x64xf32>
    %cst_3 = arith.constant 0.000000e+00 : f32
    %3 = vector.broadcast %cst_3 : f32 to vector<512x64xf32>
    %4 = arith.cmpf oge, %2, %3 : vector<512x64xf32>
    %cst_4 = arith.constant 2.000000e-01 : f32
    %5 = vector.broadcast %cst_4 : f32 to vector<512x64xf32>
    %6 = arith.mulf %5, %2 : vector<512x64xf32>
    %7 = arith.select %4, %2, %6 : vector<512x64xi1>, vector<512x64xf32>
    %c0_5 = arith.constant 0 : index
    %c0_6 = arith.constant 0 : index
    %8 = vector.load %arg3[%c0_5, %c0_6] : memref<512x64xf32, #tpu.memory_space<vmem>>, vector<512x64xf32>
    tpu.vector_store %arg3[%c0_5, %c0_6], %7 {strides = array<i32>} : memref<512x64xf32, #tpu.memory_space<vmem>>, vector<512x64xf32>,
    return
  }
  func.func @transform_0(%arg0: i32) -> (i32, i32) {
    %c0_i32 = arith.constant 0 : i32
    %c0_i32_0 = arith.constant 0 : i32
    return %arg0, %c0_i32 : i32, i32
  }
  func.func @transform_1(%arg0: i32) -> (i32, i32) {
    %c0_i32 = arith.constant 0 : i32
    %c0_i32_0 = arith.constant 0 : i32
    %c0_i32_1 = arith.constant 0 : i32
    return %c0_i32, %c0_i32_0 : i32, i32
  }
  func.func @transform_2(%arg0: i32) -> (i32, i32) {
    %c0_i32 = arith.constant 0 : i32
    %c0_i32_0 = arith.constant 0 : i32
    return %arg0, %c0_i32 : i32, i32
  }
}

</mosaic_0001>

<bundles_post_ra>
// kernel: tpu_custom_call.1
= control target key start
LH: loop header
LB: loop body
LE: loop exit
PB: predicated region body
PF: predicated region fallthrough
CT: control target
= control target key end

     0   :  { %s1415_s9 = smov 0   ;;  %s1653_s0 = inlined_call_operand.vmem [shape: bf16[2048,108], index: 0, kind: input, shape index: {}]   ;;  %s1654_s1 = inlined_call_operand.vmem [shape: bf16[108,64], index: 1, kind: input, shape index: {}]   ;;  %s1655_s2 = inlined_call_operand.vmem [shape: f32[2048,64], index: 2, kind: output, shape index: {}]  }
   0x1 LB: > { %s1130_s10 = sadd.s32 4294967295, %s1398_s9   ;;  %p1134_p0 = scmp.ge.s32.totalorder %s1398_s9, 1  ;;  %s1398_s9 = sphi %s1415_s9, %s12_s9  }
   0x2   : > { %p113_p1 = scmp.lt.s32.totalorder %s1398_s9, 5 }
   0x4   : > { %p114_p2 = pnand %p1134_p0, %p113_p1 }
   0x5   : > { %s1135_s15 = sshll.u32 (!%p114_p2), %s1130_s10, 6 }
   0x6   : > { %117 = sbr.rel (%p114_p2) target bundleno = 300 (0x12c), region = 28  ;;  %p136_p3 = scmp.lt.s32.totalorder (!%p114_p2), %s1135_s15, 255 }
   0xb   : > { %v1353_v0 = vld [vmem:[%s1654_s1 + $0x30] sm:$0x3f]   ;;  %vm524_vm0 = vcmask 1045504   ;;  %v1354_v1 = vld [vmem:[%s1654_s1 + $0x28] sm:$0xff]   ;;  %v1355_v3 = vld [vmem:[%s1654_s1 + $0x20] sm:$0xff]   ;;  %s1657_s15 = smov (!%p136_p3, %s1135_s15), 255 }
   0xc   : > { %1343 = vmatprep.subr.msk.bf16.mxu0 %vm524_vm0, %v1353_v0  ;;  %1344 = vmatprep.subr.msk.bf16.mxu1 %vm524_vm0, %v1353_v0  ;;  %v526_v2 = vsel %vm524_vm0, %v1353_v0, 0  ;;  %v1356_v4 = vld [vmem:[%s1654_s1 + $0x18] sm:$0xff]   ;;  %s1136_s20 = sshll.u32 %s1657_s15, 2  ;;  %vm427_vm1 = vcmask 883712   ;;  %v1357_v7 = vld [vmem:[%s1654_s1 + $0x10] sm:$0xff]   ;;  %v1358_v8 = vld [vmem:[%s1654_s1 + $0x8] sm:$0xff]  }
   0xd   : > { %1252 = vmatpush3.bf16.msra.mxu0 %v526_v2  ;;  %1336 = vmatpush3.bf16.msra.mxu1 %v526_v2  ;;  %s1441_s23 = scalar_lea.vmem %s1653_s0, %s1136_s20  ;;  %v1359_v9 = vld [vmem:[%s1654_s1] sm:$0xff]   ;;  %s1138_s30 = sshll.u32 %s1657_s15, 3  ;;  %vm1009_vm2 = vcmask 523264  }
   0xe   : > { %1253 = vmatprep.subr.bf16.mxu0 %v1354_v1  ;;  %1330 = vmatprep.subr.bf16.mxu1 %v1354_v1  ;;  %v1360_v5 = vld [vmem:[%s1441_s23] sm:$0xff]   ;;  %v1362_v10 = vld [vmem:[%s1441_s23 + $0x8] sm:$0xff]   ;;  %v1364_v12 = vld [vmem:[%s1441_s23 + $0x10] sm:$0xff]   ;;  %s1520_s5 = scalar_lea.vmem %s1655_s2, %s1138_s30 }
   0xf   : > { %v1361_v6 = vld [vmem:[%s1441_s23 + $0x80] sm:$0xff]   ;;  %1265 = vmatprep.mubr.msk.bf16.mxu0 %vm427_vm1, %v1360_v5  ;;  %v1363_v11 = vld [vmem:[%s1441_s23 + $0x88] sm:$0xff]   ;;  %v1365_v13 = vld [vmem:[%s1441_s23 + $0x90] sm:$0xff]  }
  0x10   : > { %1297 = vmatprep.mubr.msk.bf16.mxu1 %vm427_vm1, %v1361_v6  ;;  %v1366_v14 = vld [vmem:[%s1441_s23 + $0x18] sm:$0xff]   ;;  %v1368_v16 = vld [vmem:[%s1441_s23 + $0x20] sm:$0xff]   ;;  %v1370_v18 = vld [vmem:[%s1441_s23 + $0x28] sm:$0xff]  }
  0x11   : > { %1254 = vmatpush3.bf16.msra.mxu0 %v1354_v1  ;;  %1337 = vmatpush3.bf16.msra.mxu1 %v1354_v1  ;;  %v1367_v15 = vld [vmem:[%s1441_s23 + $0x98] sm:$0xff]   ;;  %v1369_v17 = vld [vmem:[%s1441_s23 + $0xa0] sm:$0xff]   ;;  %v1371_v19 = vld [vmem:[%s1441_s23 + $0xa8] sm:$0xff]  }
  0x12   : > { %1255 = vmatprep.subr.bf16.mxu0 %v1355_v3  ;;  %1331 = vmatprep.subr.bf16.mxu1 %v1355_v3  ;;  %v1372_v20 = vld [vmem:[%s1441_s23 + $0x30] sm:$0xff]   ;;  %v1374_v22 = vld [vmem:[%s1441_s23 + $0x38] sm:$0xff]   ;;  %v1376_v24 = vld [vmem:[%s1441_s23 + $0x40] sm:$0xff]  }
  0x13   : > { %v1373_v21 = vld [vmem:[%s1441_s23 + $0xb0] sm:$0xff]   ;;  %v1375_v23 = vld [vmem:[%s1441_s23 + $0xb8] sm:$0xff]   ;;  %v1377_v25 = vld [vmem:[%s1441_s23 + $0xc0] sm:$0xff]  }
  0x14   : > { %v1378_v26 = vld [vmem:[%s1441_s23 + $0x48] sm:$0xff]   ;;  %v1380_v28 = vld [vmem:[%s1441_s23 + $0x50] sm:$0xff]   ;;  %v1382_v30 = vld [vmem:[%s1441_s23 + $0x58] sm:$0xff]  }
  0x15   : > { %1256 = vmatpush3.bf16.msra.mxu0 %v1355_v3  ;;  %1338 = vmatpush3.bf16.msra.mxu1 %v1355_v3  ;;  %v1379_v27 = vld [vmem:[%s1441_s23 + $0xc8] sm:$0xff]   ;;  %v1381_v29 = vld [vmem:[%s1441_s23 + $0xd0] sm:$0xff]   ;;  %v1383_v31 = vld [vmem:[%s1441_s23 + $0xd8] sm:$0xff]  }
  0x16   : > { %1257 = vmatprep.subr.bf16.mxu0 %v1356_v4  ;;  %1332 = vmatprep.subr.bf16.mxu1 %v1356_v4  ;;  %v1384_v32 = vld [vmem:[%s1441_s23 + $0x60] sm:$0xff]   ;;  %v1386_v34 = vld [vmem:[%s1441_s23 + $0x68] sm:$0xff]   ;;  %v1388_v36 = vld [vmem:[%s1441_s23 + $0x70] sm:$0xff]  }
  0x17   : > { %v1385_v33 = vld [vmem:[%s1441_s23 + $0xe0] sm:$0xff]   ;;  %v1387_v35 = vld [vmem:[%s1441_s23 + $0xe8] sm:$0xff]   ;;  %v1389_v37 = vld [vmem:[%s1441_s23 + $0xf0] sm:$0xff]  }
  0x18   : > { %v1390_v38 = vld [vmem:[%s1441_s23 + $0x78] sm:$0xff]  }
  0x19   : > { %1258 = vmatpush3.bf16.msra.mxu0 %v1356_v4  ;;  %1339 = vmatpush3.bf16.msra.mxu1 %v1356_v4  ;;  %v1391_v39 = vld [vmem:[%s1441_s23 + $0xf8] sm:$0xff]  }
  0x1a   : > { %1259 = vmatprep.subr.bf16.mxu0 %v1357_v7  ;;  %1333 = vmatprep.subr.bf16.mxu1 %v1357_v7 }
  0x1d   : > { %1260 = vmatpush3.bf16.msra.mxu0 %v1357_v7  ;;  %1340 = vmatpush3.bf16.msra.mxu1 %v1357_v7 }
  0x1e   : > { %1261 = vmatprep.subr.bf16.mxu0 %v1358_v8  ;;  %1334 = vmatprep.subr.bf16.mxu1 %v1358_v8 }
  0x21   : > { %1262 = vmatpush3.bf16.msra.mxu0 %v1358_v8  ;;  %1341 = vmatpush3.bf16.msra.mxu1 %v1358_v8 }
  0x22   : > { %1263 = vmatprep.subr.bf16.mxu0 %v1359_v9  ;;  %1335 = vmatprep.subr.bf16.mxu1 %v1359_v9 }
  0x25   : > { %1264 = vmatpush3.bf16.msra.mxu0 %v1359_v9  ;;  %1342 = vmatpush3.bf16.msra.mxu1 %v1359_v9 }
  0x28   : > { %1266 = vmatmul.mubr.msk.bf16.vlgmr.msra.gmra.mxu0 %vm427_vm1, %v1362_v10  ;;  %1298 = vmatmul.mubr.msk.bf16.vlgmr.msra.gmra.mxu1 %vm427_vm1, %v1363_v11 }
  0x29   : > { %1269 = vmatprep.mubr.msk.bf16.mxu0 %vm427_vm1, %v1364_v12  ;;  %1301 = vmatprep.mubr.msk.bf16.mxu1 %vm427_vm1, %v1365_v13 }
  0x30   : > { %1270 = vmatmul.mubr.msk.bf16.gmra.mxu0 %vm427_vm1, %v1366_v14  ;;  %1302 = vmatmul.mubr.msk.bf16.gmra.mxu1 %vm427_vm1, %v1367_v15 }
  0x31   : > { %1273 = vmatprep.mubr.msk.bf16.mxu0 %vm427_vm1, %v1368_v16  ;;  %1305 = vmatprep.mubr.msk.bf16.mxu1 %vm427_vm1, %v1369_v17 }
  0x38   : > { %1274 = vmatmul.mubr.msk.bf16.gmra.mxu0 %vm427_vm1, %v1370_v18  ;;  %1306 = vmatmul.mubr.msk.bf16.gmra.mxu1 %vm427_vm1, %v1371_v19 }
  0x39   : > { %1277 = vmatprep.mubr.msk.bf16.mxu0 %vm427_vm1, %v1372_v20  ;;  %1309 = vmatprep.mubr.msk.bf16.mxu1 %vm427_vm1, %v1373_v21 }
  0x40   : > { %1278 = vmatmul.mubr.msk.bf16.gmra.mxu0 %vm427_vm1, %v1374_v22  ;;  %1310 = vmatmul.mubr.msk.bf16.gmra.mxu1 %vm427_vm1, %v1375_v23 }
  0x41   : > { %1281 = vmatprep.mubr.msk.bf16.mxu0 %vm427_vm1, %v1376_v24  ;;  %1313 = vmatprep.mubr.msk.bf16.mxu1 %vm427_vm1, %v1377_v25 }
  0x48   : > { %1282 = vmatmul.mubr.msk.bf16.gmra.mxu0 %vm427_vm1, %v1378_v26  ;;  %1314 = vmatmul.mubr.msk.bf16.gmra.mxu1 %vm427_vm1, %v1379_v27 }
  0x49   : > { %1285 = vmatprep.mubr.msk.bf16.mxu0 %vm427_vm1, %v1380_v28  ;;  %1317 = vmatprep.mubr.msk.bf16.mxu1 %vm427_vm1, %v1381_v29 }
  0x50   : > { %1286 = vmatmul.mubr.msk.bf16.gmra.mxu0 %vm427_vm1, %v1382_v30  ;;  %1318 = vmatmul.mubr.msk.bf16.gmra.mxu1 %vm427_vm1, %v1383_v31 }
  0x51   : > { %1289 = vmatprep.mubr.msk.bf16.mxu0 %vm427_vm1, %v1384_v32  ;;  %1321 = vmatprep.mubr.msk.bf16.mxu1 %vm427_vm1, %v1385_v33 }
  0x58   : > { %1290 = vmatmul.mubr.msk.bf16.gmra.mxu0 %vm427_vm1, %v1386_v34  ;;  %1322 = vmatmul.mubr.msk.bf16.gmra.mxu1 %vm427_vm1, %v1387_v35 }
  0x59   : > { %1293 = vmatprep.mubr.msk.bf16.mxu0 %vm427_vm1, %v1388_v36  ;;  %1325 = vmatprep.mubr.msk.bf16.mxu1 %vm427_vm1, %v1389_v37 }
  0x60   : > { %1294 = vmatmul.mubr.msk.bf16.gmra.mxu0 %vm427_vm1, %v1390_v38  ;;  %1326 = vmatmul.mubr.msk.bf16.gmra.mxu1 %vm427_vm1, %v1391_v39 }
  0xe8   : > { %v1267_v40 = vpop.f32.mrf.mxu0  ;;  %v1299_v41 = vpop.f32.mrf.mxu1 }
  0xe9   : > { %vm819_vm3 = vcmp.ge.f32.partialorder %v1267_v40, 0.0  ;;  %v883_v42 = vmul.f32 0.2, %v1267_v40  ;;  %vm851_vm4 = vcmp.ge.f32.partialorder %v1299_v41, 0.0  ;;  %v915_v43 = vmul.f32 0.2, %v1299_v41 }
  0xea   : > { %v562_v44 = vpop.f32.mrf.mxu0  ;;  %v690_v45 = vpop.f32.mrf.mxu1 }
  0xeb   : > { %v947_v46 = vsel %vm819_vm3, %v1267_v40, %v883_v42  ;;  %v979_v47 = vsel %vm851_vm4, %v1299_v41, %v915_v43  ;;  %vm817_vm5 = vcmp.ge.f32.partialorder %v562_v44, 0.0  ;;  %v881_v48 = vmul.f32 0.2, %v562_v44 }
  0xec   : > { %1012 = vst.msk [vmem:[%s1520_s5 + $0x10] sm:$0xff] %vm1009_vm2, %v947_v46  ;;  %1044 = vst.msk [vmem:[%s1520_s5 + $0x110] sm:$0xff] %vm1009_vm2, %v979_v47  ;;  %vm849_vm6 = vcmp.ge.f32.partialorder %v690_v45, 0.0  ;;  %v913_v49 = vmul.f32 0.2, %v690_v45  ;;  %v1268_v50 = vpop.f32.mrf.mxu0  ;;  %v1300_v51 = vpop.f32.mrf.mxu1 }
  0xed   : > { %v945_v52 = vsel %vm817_vm5, %v562_v44, %v881_v48  ;;  %vm820_vm7 = vcmp.ge.f32.partialorder %v1268_v50, 0.0  ;;  %v884_v53 = vmul.f32 0.2, %v1268_v50  ;;  %vm852_vm8 = vcmp.ge.f32.partialorder %v1300_v51, 0.0 }
  0xee   : > { %1010 = vst.msk [vmem:[%s1520_s5] sm:$0xff] %vm1009_vm2, %v945_v52  ;;  %v977_v54 = vsel %vm849_vm6, %v690_v45, %v913_v49  ;;  %v916_v55 = vmul.f32 0.2, %v1300_v51  ;;  %v565_v56 = vpop.f32.mrf.mxu0  ;;  %v693_v57 = vpop.f32.mrf.mxu1 }
  0xef   : > { %1042 = vst.msk [vmem:[%s1520_s5 + $0x100] sm:$0xff] %vm1009_vm2, %v977_v54  ;;  %v948_v58 = vsel %vm820_vm7, %v1268_v50, %v884_v53  ;;  %vm818_vm9 = vcmp.ge.f32.partialorder %v565_v56, 0.0  ;;  %v882_v59 = vmul.f32 0.2, %v565_v56  ;;  %vm850_vm10 = vcmp.ge.f32.partialorder %v693_v57, 0.0 }
  0xf0   : > { %1013 = vst.msk [vmem:[%s1520_s5 + $0x18] sm:$0xff] %vm1009_vm2, %v948_v58  ;;  %v980_v60 = vsel %vm852_vm8, %v1300_v51, %v916_v55  ;;  %v914_v61 = vmul.f32 0.2, %v693_v57  ;;  %v1271_v62 = vpop.f32.mrf.mxu0  ;;  %v1303_v63 = vpop.f32.mrf.mxu1 }
  0xf1   : > { %1045 = vst.msk [vmem:[%s1520_s5 + $0x118] sm:$0xff] %vm1009_vm2, %v980_v60  ;;  %v946_v0 = vsel %vm818_vm9, %v565_v56, %v882_v59  ;;  %vm823_vm11 = vcmp.ge.f32.partialorder %v1271_v62, 0.0  ;;  %v887_v1 = vmul.f32 0.2, %v1271_v62  ;;  %vm855_vm12 = vcmp.ge.f32.partialorder %v1303_v63, 0.0 }
  0xf2   : > { %1011 = vst.msk [vmem:[%s1520_s5 + $0x8] sm:$0xff] %vm1009_vm2, %v946_v0  ;;  %v978_v2 = vsel %vm850_vm10, %v693_v57, %v914_v61  ;;  %v919_v3 = vmul.f32 0.2, %v1303_v63  ;;  %v578_v4 = vpop.f32.mrf.mxu0  ;;  %v706_v5 = vpop.f32.mrf.mxu1 }
  0xf3   : > { %1043 = vst.msk [vmem:[%s1520_s5 + $0x108] sm:$0xff] %vm1009_vm2, %v978_v2  ;;  %v951_v6 = vsel %vm823_vm11, %v1271_v62, %v887_v1  ;;  %vm821_vm13 = vcmp.ge.f32.partialorder %v578_v4, 0.0  ;;  %v885_v7 = vmul.f32 0.2, %v578_v4  ;;  %vm853_vm14 = vcmp.ge.f32.partialorder %v706_v5, 0.0 }
  0xf4   : > { %1016 = vst.msk [vmem:[%s1520_s5 + $0x30] sm:$0xff] %vm1009_vm2, %v951_v6  ;;  %v983_v8 = vsel %vm855_vm12, %v1303_v63, %v919_v3  ;;  %v917_v9 = vmul.f32 0.2, %v706_v5  ;;  %v1272_v10 = vpop.f32.mrf.mxu0  ;;  %v1304_v11 = vpop.f32.mrf.mxu1 }
  0xf5   : > { %1048 = vst.msk [vmem:[%s1520_s5 + $0x130] sm:$0xff] %vm1009_vm2, %v983_v8  ;;  %v949_v12 = vsel %vm821_vm13, %v578_v4, %v885_v7  ;;  %vm824_vm15 = vcmp.ge.f32.partialorder %v1272_v10, 0.0  ;;  %v888_v13 = vmul.f32 0.2, %v1272_v10  ;;  %vm856_vm0 = vcmp.ge.f32.partialorder %v1304_v11, 0.0 }
  0xf6   : > { %1014 = vst.msk [vmem:[%s1520_s5 + $0x20] sm:$0xff] %vm1009_vm2, %v949_v12  ;;  %v981_v14 = vsel %vm853_vm14, %v706_v5, %v917_v9  ;;  %v920_v15 = vmul.f32 0.2, %v1304_v11  ;;  %v581_v16 = vpop.f32.mrf.mxu0  ;;  %v709_v17 = vpop.f32.mrf.mxu1 }
  0xf7   : > { %1046 = vst.msk [vmem:[%s1520_s5 + $0x120] sm:$0xff] %vm1009_vm2, %v981_v14  ;;  %v952_v18 = vsel %vm824_vm15, %v1272_v10, %v888_v13  ;;  %vm822_vm1 = vcmp.ge.f32.partialorder %v581_v16, 0.0  ;;  %v886_v19 = vmul.f32 0.2, %v581_v16  ;;  %vm854_vm3 = vcmp.ge.f32.partialorder %v709_v17, 0.0 }
  0xf8   : > { %1017 = vst.msk [vmem:[%s1520_s5 + $0x38] sm:$0xff] %vm1009_vm2, %v952_v18  ;;  %v984_v20 = vsel %vm856_vm0, %v1304_v11, %v920_v15  ;;  %v918_v21 = vmul.f32 0.2, %v709_v17  ;;  %v1275_v22 = vpop.f32.mrf.mxu0  ;;  %v1307_v23 = vpop.f32.mrf.mxu1 }
  0xf9   : > { %1049 = vst.msk [vmem:[%s1520_s5 + $0x138] sm:$0xff] %vm1009_vm2, %v984_v20  ;;  %v950_v24 = vsel %vm822_vm1, %v581_v16, %v886_v19  ;;  %vm827_vm4 = vcmp.ge.f32.partialorder %v1275_v22, 0.0  ;;  %v891_v25 = vmul.f32 0.2, %v1275_v22  ;;  %vm859_vm5 = vcmp.ge.f32.partialorder %v1307_v23, 0.0 }
  0xfa   : > { %1015 = vst.msk [vmem:[%s1520_s5 + $0x28] sm:$0xff] %vm1009_vm2, %v950_v24  ;;  %v982_v26 = vsel %vm854_vm3, %v709_v17, %v918_v21  ;;  %v923_v27 = vmul.f32 0.2, %v1307_v23  ;;  %v594_v28 = vpop.f32.mrf.mxu0  ;;  %v722_v29 = vpop.f32.mrf.mxu1 }
  0xfb   : > { %1047 = vst.msk [vmem:[%s1520_s5 + $0x128] sm:$0xff] %vm1009_vm2, %v982_v26  ;;  %v955_v30 = vsel %vm827_vm4, %v1275_v22, %v891_v25  ;;  %vm825_vm6 = vcmp.ge.f32.partialorder %v594_v28, 0.0  ;;  %v889_v31 = vmul.f32 0.2, %v594_v28  ;;  %vm857_vm7 = vcmp.ge.f32.partialorder %v722_v29, 0.0 }
  0xfc   : > { %1020 = vst.msk [vmem:[%s1520_s5 + $0x50] sm:$0xff] %vm1009_vm2, %v955_v30  ;;  %v987_v32 = vsel %vm859_vm5, %v1307_v23, %v923_v27  ;;  %v921_v33 = vmul.f32 0.2, %v722_v29  ;;  %v1276_v34 = vpop.f32.mrf.mxu0  ;;  %v1308_v35 = vpop.f32.mrf.mxu1 }
  0xfd   : > { %1052 = vst.msk [vmem:[%s1520_s5 + $0x150] sm:$0xff] %vm1009_vm2, %v987_v32  ;;  %v953_v36 = vsel %vm825_vm6, %v594_v28, %v889_v31  ;;  %vm828_vm8 = vcmp.ge.f32.partialorder %v1276_v34, 0.0  ;;  %v892_v37 = vmul.f32 0.2, %v1276_v34  ;;  %vm860_vm9 = vcmp.ge.f32.partialorder %v1308_v35, 0.0 }
  0xfe   : > { %1018 = vst.msk [vmem:[%s1520_s5 + $0x40] sm:$0xff] %vm1009_vm2, %v953_v36  ;;  %v985_v38 = vsel %vm857_vm7, %v722_v29, %v921_v33  ;;  %v924_v39 = vmul.f32 0.2, %v1308_v35  ;;  %v597_v40 = vpop.f32.mrf.mxu0  ;;  %v725_v41 = vpop.f32.mrf.mxu1 }
  0xff   : > { %1050 = vst.msk [vmem:[%s1520_s5 + $0x140] sm:$0xff] %vm1009_vm2, %v985_v38  ;;  %v956_v42 = vsel %vm828_vm8, %v1276_v34, %v892_v37  ;;  %vm826_vm10 = vcmp.ge.f32.partialorder %v597_v40, 0.0  ;;  %v890_v43 = vmul.f32 0.2, %v597_v40  ;;  %vm858_vm11 = vcmp.ge.f32.partialorder %v725_v41, 0.0 }
 0x100   : > { %1021 = vst.msk [vmem:[%s1520_s5 + $0x58] sm:$0xff] %vm1009_vm2, %v956_v42  ;;  %v988_v44 = vsel %vm860_vm9, %v1308_v35, %v924_v39  ;;  %v922_v45 = vmul.f32 0.2, %v725_v41  ;;  %v1279_v46 = vpop.f32.mrf.mxu0  ;;  %v1311_v47 = vpop.f32.mrf.mxu1 }
 0x101   : > { %1053 = vst.msk [vmem:[%s1520_s5 + $0x158] sm:$0xff] %vm1009_vm2, %v988_v44  ;;  %v954_v48 = vsel %vm826_vm10, %v597_v40, %v890_v43  ;;  %vm831_vm12 = vcmp.ge.f32.partialorder %v1279_v46, 0.0  ;;  %v895_v49 = vmul.f32 0.2, %v1279_v46  ;;  %vm863_vm13 = vcmp.ge.f32.partialorder %v1311_v47, 0.0 }
 0x102   : > { %1019 = vst.msk [vmem:[%s1520_s5 + $0x48] sm:$0xff] %vm1009_vm2, %v954_v48  ;;  %v986_v50 = vsel %vm858_vm11, %v725_v41, %v922_v45  ;;  %v927_v51 = vmul.f32 0.2, %v1311_v47  ;;  %v610_v52 = vpop.f32.mrf.mxu0  ;;  %v738_v53 = vpop.f32.mrf.mxu1 }
 0x103   : > { %1051 = vst.msk [vmem:[%s1520_s5 + $0x148] sm:$0xff] %vm1009_vm2, %v986_v50  ;;  %v959_v54 = vsel %vm831_vm12, %v1279_v46, %v895_v49  ;;  %vm829_vm14 = vcmp.ge.f32.partialorder %v610_v52, 0.0  ;;  %v893_v55 = vmul.f32 0.2, %v610_v52  ;;  %vm861_vm15 = vcmp.ge.f32.partialorder %v738_v53, 0.0 }
 0x104   : > { %1024 = vst.msk [vmem:[%s1520_s5 + $0x70] sm:$0xff] %vm1009_vm2, %v959_v54  ;;  %v991_v56 = vsel %vm863_vm13, %v1311_v47, %v927_v51  ;;  %v925_v57 = vmul.f32 0.2, %v738_v53  ;;  %v1280_v58 = vpop.f32.mrf.mxu0  ;;  %v1312_v59 = vpop.f32.mrf.mxu1 }
 0x105   : > { %1056 = vst.msk [vmem:[%s1520_s5 + $0x170] sm:$0xff] %vm1009_vm2, %v991_v56  ;;  %v957_v60 = vsel %vm829_vm14, %v610_v52, %v893_v55  ;;  %vm832_vm0 = vcmp.ge.f32.partialorder %v1280_v58, 0.0  ;;  %v896_v61 = vmul.f32 0.2, %v1280_v58  ;;  %vm864_vm1 = vcmp.ge.f32.partialorder %v1312_v59, 0.0 }
 0x106   : > { %1022 = vst.msk [vmem:[%s1520_s5 + $0x60] sm:$0xff] %vm1009_vm2, %v957_v60  ;;  %v989_v62 = vsel %vm861_vm15, %v738_v53, %v925_v57  ;;  %v928_v63 = vmul.f32 0.2, %v1312_v59  ;;  %v613_v0 = vpop.f32.mrf.mxu0  ;;  %v741_v1 = vpop.f32.mrf.mxu1 }
 0x107   : > { %1054 = vst.msk [vmem:[%s1520_s5 + $0x160] sm:$0xff] %vm1009_vm2, %v989_v62  ;;  %v960_v2 = vsel %vm832_vm0, %v1280_v58, %v896_v61  ;;  %vm830_vm3 = vcmp.ge.f32.partialorder %v613_v0, 0.0  ;;  %v894_v3 = vmul.f32 0.2, %v613_v0  ;;  %vm862_vm4 = vcmp.ge.f32.partialorder %v741_v1, 0.0 }
 0x108   : > { %1025 = vst.msk [vmem:[%s1520_s5 + $0x78] sm:$0xff] %vm1009_vm2, %v960_v2  ;;  %v992_v4 = vsel %vm864_vm1, %v1312_v59, %v928_v63  ;;  %v926_v5 = vmul.f32 0.2, %v741_v1  ;;  %v1283_v6 = vpop.f32.mrf.mxu0  ;;  %v1315_v7 = vpop.f32.mrf.mxu1 }
 0x109   : > { %1057 = vst.msk [vmem:[%s1520_s5 + $0x178] sm:$0xff] %vm1009_vm2, %v992_v4  ;;  %v958_v8 = vsel %vm830_vm3, %v613_v0, %v894_v3  ;;  %vm835_vm5 = vcmp.ge.f32.partialorder %v1283_v6, 0.0  ;;  %v899_v9 = vmul.f32 0.2, %v1283_v6  ;;  %vm867_vm6 = vcmp.ge.f32.partialorder %v1315_v7, 0.0 }
 0x10a   : > { %1023 = vst.msk [vmem:[%s1520_s5 + $0x68] sm:$0xff] %vm1009_vm2, %v958_v8  ;;  %v990_v10 = vsel %vm862_vm4, %v741_v1, %v926_v5  ;;  %v931_v11 = vmul.f32 0.2, %v1315_v7  ;;  %v626_v12 = vpop.f32.mrf.mxu0  ;;  %v754_v13 = vpop.f32.mrf.mxu1 }
 0x10b   : > { %1055 = vst.msk [vmem:[%s1520_s5 + $0x168] sm:$0xff] %vm1009_vm2, %v990_v10  ;;  %v963_v14 = vsel %vm835_vm5, %v1283_v6, %v899_v9  ;;  %vm833_vm7 = vcmp.ge.f32.partialorder %v626_v12, 0.0  ;;  %v897_v15 = vmul.f32 0.2, %v626_v12  ;;  %vm865_vm8 = vcmp.ge.f32.partialorder %v754_v13, 0.0 }
 0x10c   : > { %1028 = vst.msk [vmem:[%s1520_s5 + $0x90] sm:$0xff] %vm1009_vm2, %v963_v14  ;;  %v995_v16 = vsel %vm867_vm6, %v1315_v7, %v931_v11  ;;  %v929_v17 = vmul.f32 0.2, %v754_v13  ;;  %v1284_v18 = vpop.f32.mrf.mxu0  ;;  %v1316_v19 = vpop.f32.mrf.mxu1 }
 0x10d   : > { %1060 = vst.msk [vmem:[%s1520_s5 + $0x190] sm:$0xff] %vm1009_vm2, %v995_v16  ;;  %v961_v20 = vsel %vm833_vm7, %v626_v12, %v897_v15  ;;  %vm836_vm9 = vcmp.ge.f32.partialorder %v1284_v18, 0.0  ;;  %v900_v21 = vmul.f32 0.2, %v1284_v18  ;;  %vm868_vm10 = vcmp.ge.f32.partialorder %v1316_v19, 0.0 }
 0x10e   : > { %1026 = vst.msk [vmem:[%s1520_s5 + $0x80] sm:$0xff] %vm1009_vm2, %v961_v20  ;;  %v993_v22 = vsel %vm865_vm8, %v754_v13, %v929_v17  ;;  %v932_v23 = vmul.f32 0.2, %v1316_v19  ;;  %v629_v24 = vpop.f32.mrf.mxu0  ;;  %v757_v25 = vpop.f32.mrf.mxu1 }
 0x10f   : > { %1058 = vst.msk [vmem:[%s1520_s5 + $0x180] sm:$0xff] %vm1009_vm2, %v993_v22  ;;  %v964_v26 = vsel %vm836_vm9, %v1284_v18, %v900_v21  ;;  %vm834_vm11 = vcmp.ge.f32.partialorder %v629_v24, 0.0  ;;  %v898_v27 = vmul.f32 0.2, %v629_v24  ;;  %vm866_vm12 = vcmp.ge.f32.partialorder %v757_v25, 0.0 }
 0x110   : > { %1029 = vst.msk [vmem:[%s1520_s5 + $0x98] sm:$0xff] %vm1009_vm2, %v964_v26  ;;  %v996_v28 = vsel %vm868_vm10, %v1316_v19, %v932_v23  ;;  %v930_v29 = vmul.f32 0.2, %v757_v25  ;;  %v1287_v30 = vpop.f32.mrf.mxu0  ;;  %v1319_v31 = vpop.f32.mrf.mxu1 }
 0x111   : > { %1061 = vst.msk [vmem:[%s1520_s5 + $0x198] sm:$0xff] %vm1009_vm2, %v996_v28  ;;  %v962_v32 = vsel %vm834_vm11, %v629_v24, %v898_v27  ;;  %vm839_vm13 = vcmp.ge.f32.partialorder %v1287_v30, 0.0  ;;  %v903_v33 = vmul.f32 0.2, %v1287_v30  ;;  %vm871_vm14 = vcmp.ge.f32.partialorder %v1319_v31, 0.0 }
 0x112   : > { %1027 = vst.msk [vmem:[%s1520_s5 + $0x88] sm:$0xff] %vm1009_vm2, %v962_v32  ;;  %v994_v34 = vsel %vm866_vm12, %v757_v25, %v930_v29  ;;  %v935_v35 = vmul.f32 0.2, %v1319_v31  ;;  %v642_v36 = vpop.f32.mrf.mxu0  ;;  %v770_v37 = vpop.f32.mrf.mxu1 }
 0x113   : > { %1059 = vst.msk [vmem:[%s1520_s5 + $0x188] sm:$0xff] %vm1009_vm2, %v994_v34  ;;  %v967_v38 = vsel %vm839_vm13, %v1287_v30, %v903_v33  ;;  %vm837_vm15 = vcmp.ge.f32.partialorder %v642_v36, 0.0  ;;  %v901_v39 = vmul.f32 0.2, %v642_v36  ;;  %vm869_vm0 = vcmp.ge.f32.partialorder %v770_v37, 0.0 }
 0x114   : > { %1032 = vst.msk [vmem:[%s1520_s5 + $0xb0] sm:$0xff] %vm1009_vm2, %v967_v38  ;;  %v999_v40 = vsel %vm871_vm14, %v1319_v31, %v935_v35  ;;  %v933_v41 = vmul.f32 0.2, %v770_v37  ;;  %v1288_v42 = vpop.f32.mrf.mxu0  ;;  %v1320_v43 = vpop.f32.mrf.mxu1 }
 0x115   : > { %1064 = vst.msk [vmem:[%s1520_s5 + $0x1b0] sm:$0xff] %vm1009_vm2, %v999_v40  ;;  %v965_v44 = vsel %vm837_vm15, %v642_v36, %v901_v39  ;;  %vm840_vm1 = vcmp.ge.f32.partialorder %v1288_v42, 0.0  ;;  %v904_v45 = vmul.f32 0.2, %v1288_v42  ;;  %vm872_vm3 = vcmp.ge.f32.partialorder %v1320_v43, 0.0 }
 0x116   : > { %1030 = vst.msk [vmem:[%s1520_s5 + $0xa0] sm:$0xff] %vm1009_vm2, %v965_v44  ;;  %v997_v46 = vsel %vm869_vm0, %v770_v37, %v933_v41  ;;  %v936_v47 = vmul.f32 0.2, %v1320_v43  ;;  %v645_v48 = vpop.f32.mrf.mxu0  ;;  %v773_v49 = vpop.f32.mrf.mxu1 }
 0x117   : > { %1062 = vst.msk [vmem:[%s1520_s5 + $0x1a0] sm:$0xff] %vm1009_vm2, %v997_v46  ;;  %v968_v50 = vsel %vm840_vm1, %v1288_v42, %v904_v45  ;;  %vm838_vm4 = vcmp.ge.f32.partialorder %v645_v48, 0.0  ;;  %v902_v51 = vmul.f32 0.2, %v645_v48  ;;  %vm870_vm5 = vcmp.ge.f32.partialorder %v773_v49, 0.0 }
 0x118   : > { %1033 = vst.msk [vmem:[%s1520_s5 + $0xb8] sm:$0xff] %vm1009_vm2, %v968_v50  ;;  %v1000_v52 = vsel %vm872_vm3, %v1320_v43, %v936_v47  ;;  %v934_v53 = vmul.f32 0.2, %v773_v49  ;;  %v1291_v54 = vpop.f32.mrf.mxu0  ;;  %v1323_v55 = vpop.f32.mrf.mxu1 }
 0x119   : > { %1065 = vst.msk [vmem:[%s1520_s5 + $0x1b8] sm:$0xff] %vm1009_vm2, %v1000_v52  ;;  %v966_v56 = vsel %vm838_vm4, %v645_v48, %v902_v51  ;;  %vm843_vm6 = vcmp.ge.f32.partialorder %v1291_v54, 0.0  ;;  %v907_v57 = vmul.f32 0.2, %v1291_v54  ;;  %vm875_vm7 = vcmp.ge.f32.partialorder %v1323_v55, 0.0 }
 0x11a   : > { %1031 = vst.msk [vmem:[%s1520_s5 + $0xa8] sm:$0xff] %vm1009_vm2, %v966_v56  ;;  %v998_v58 = vsel %vm870_vm5, %v773_v49, %v934_v53  ;;  %v939_v59 = vmul.f32 0.2, %v1323_v55  ;;  %v658_v60 = vpop.f32.mrf.mxu0  ;;  %v786_v61 = vpop.f32.mrf.mxu1 }
 0x11b   : > { %1063 = vst.msk [vmem:[%s1520_s5 + $0x1a8] sm:$0xff] %vm1009_vm2, %v998_v58  ;;  %v971_v62 = vsel %vm843_vm6, %v1291_v54, %v907_v57  ;;  %vm841_vm8 = vcmp.ge.f32.partialorder %v658_v60, 0.0  ;;  %v905_v63 = vmul.f32 0.2, %v658_v60  ;;  %vm873_vm9 = vcmp.ge.f32.partialorder %v786_v61, 0.0 }
 0x11c   : > { %1036 = vst.msk [vmem:[%s1520_s5 + $0xd0] sm:$0xff] %vm1009_vm2, %v971_v62  ;;  %v1003_v0 = vsel %vm875_vm7, %v1323_v55, %v939_v59  ;;  %v937_v1 = vmul.f32 0.2, %v786_v61  ;;  %v1292_v2 = vpop.f32.mrf.mxu0  ;;  %v1324_v3 = vpop.f32.mrf.mxu1 }
 0x11d   : > { %1068 = vst.msk [vmem:[%s1520_s5 + $0x1d0] sm:$0xff] %vm1009_vm2, %v1003_v0  ;;  %v969_v4 = vsel %vm841_vm8, %v658_v60, %v905_v63  ;;  %vm844_vm10 = vcmp.ge.f32.partialorder %v1292_v2, 0.0  ;;  %v908_v5 = vmul.f32 0.2, %v1292_v2  ;;  %vm876_vm11 = vcmp.ge.f32.partialorder %v1324_v3, 0.0 }
 0x11e   : > { %1034 = vst.msk [vmem:[%s1520_s5 + $0xc0] sm:$0xff] %vm1009_vm2, %v969_v4  ;;  %v1001_v6 = vsel %vm873_vm9, %v786_v61, %v937_v1  ;;  %v940_v7 = vmul.f32 0.2, %v1324_v3  ;;  %v661_v8 = vpop.f32.mrf.mxu0  ;;  %v789_v9 = vpop.f32.mrf.mxu1 }
 0x11f   : > { %1066 = vst.msk [vmem:[%s1520_s5 + $0x1c0] sm:$0xff] %vm1009_vm2, %v1001_v6  ;;  %v972_v10 = vsel %vm844_vm10, %v1292_v2, %v908_v5  ;;  %vm842_vm12 = vcmp.ge.f32.partialorder %v661_v8, 0.0  ;;  %v906_v11 = vmul.f32 0.2, %v661_v8  ;;  %vm874_vm13 = vcmp.ge.f32.partialorder %v789_v9, 0.0 }
 0x120   : > { %1037 = vst.msk [vmem:[%s1520_s5 + $0xd8] sm:$0xff] %vm1009_vm2, %v972_v10  ;;  %v1004_v12 = vsel %vm876_vm11, %v1324_v3, %v940_v7  ;;  %v938_v13 = vmul.f32 0.2, %v789_v9  ;;  %v1295_v14 = vpop.f32.mrf.mxu0  ;;  %v1327_v15 = vpop.f32.mrf.mxu1 }
 0x121   : > { %1069 = vst.msk [vmem:[%s1520_s5 + $0x1d8] sm:$0xff] %vm1009_vm2, %v1004_v12  ;;  %v970_v16 = vsel %vm842_vm12, %v661_v8, %v906_v11  ;;  %vm847_vm14 = vcmp.ge.f32.partialorder %v1295_v14, 0.0  ;;  %v911_v17 = vmul.f32 0.2, %v1295_v14  ;;  %vm879_vm15 = vcmp.ge.f32.partialorder %v1327_v15, 0.0 }
 0x122   : > { %1035 = vst.msk [vmem:[%s1520_s5 + $0xc8] sm:$0xff] %vm1009_vm2, %v970_v16  ;;  %v1002_v18 = vsel %vm874_vm13, %v789_v9, %v938_v13  ;;  %v943_v19 = vmul.f32 0.2, %v1327_v15  ;;  %v674_v20 = vpop.f32.mrf.mxu0  ;;  %v802_v21 = vpop.f32.mrf.mxu1 }
 0x123   : > { %1067 = vst.msk [vmem:[%s1520_s5 + $0x1c8] sm:$0xff] %vm1009_vm2, %v1002_v18  ;;  %v975_v22 = vsel %vm847_vm14, %v1295_v14, %v911_v17  ;;  %vm845_vm0 = vcmp.ge.f32.partialorder %v674_v20, 0.0  ;;  %v909_v23 = vmul.f32 0.2, %v674_v20  ;;  %vm877_vm1 = vcmp.ge.f32.partialorder %v802_v21, 0.0 }
 0x124   : > { %1040 = vst.msk [vmem:[%s1520_s5 + $0xf0] sm:$0xff] %vm1009_vm2, %v975_v22  ;;  %v1007_v24 = vsel %vm879_vm15, %v1327_v15, %v943_v19  ;;  %v941_v25 = vmul.f32 0.2, %v802_v21  ;;  %v1296_v26 = vpop.f32.mrf.mxu0  ;;  %v1328_v27 = vpop.f32.mrf.mxu1 }
 0x125   : > { %1072 = vst.msk [vmem:[%s1520_s5 + $0x1f0] sm:$0xff] %vm1009_vm2, %v1007_v24  ;;  %v973_v28 = vsel %vm845_vm0, %v674_v20, %v909_v23  ;;  %vm848_vm3 = vcmp.ge.f32.partialorder %v1296_v26, 0.0  ;;  %v912_v29 = vmul.f32 0.2, %v1296_v26  ;;  %vm880_vm4 = vcmp.ge.f32.partialorder %v1328_v27, 0.0 }
 0x126   : > { %1038 = vst.msk [vmem:[%s1520_s5 + $0xe0] sm:$0xff] %vm1009_vm2, %v973_v28  ;;  %v1005_v30 = vsel %vm877_vm1, %v802_v21, %v941_v25  ;;  %v944_v31 = vmul.f32 0.2, %v1328_v27  ;;  %v677_v32 = vpop.f32.mrf.mxu0  ;;  %v805_v33 = vpop.f32.mrf.mxu1 }
 0x127   : > { %1070 = vst.msk [vmem:[%s1520_s5 + $0x1e0] sm:$0xff] %vm1009_vm2, %v1005_v30  ;;  %v976_v34 = vsel %vm848_vm3, %v1296_v26, %v912_v29  ;;  %vm846_vm5 = vcmp.ge.f32.partialorder %v677_v32, 0.0  ;;  %v910_v35 = vmul.f32 0.2, %v677_v32  ;;  %vm878_vm6 = vcmp.ge.f32.partialorder %v805_v33, 0.0 }
 0x128   : > { %1041 = vst.msk [vmem:[%s1520_s5 + $0xf8] sm:$0xff] %vm1009_vm2, %v976_v34  ;;  %v1008_v36 = vsel %vm880_vm4, %v1328_v27, %v944_v31  ;;  %v942_v37 = vmul.f32 0.2, %v805_v33 }
 0x129   : > { %1073 = vst.msk [vmem:[%s1520_s5 + $0x1f8] sm:$0xff] %vm1009_vm2, %v1008_v36  ;;  %v974_v38 = vsel %vm846_vm5, %v677_v32, %v910_v35 }
 0x12a   : > { %1039 = vst.msk [vmem:[%s1520_s5 + $0xe8] sm:$0xff] %vm1009_vm2, %v974_v38  ;;  %v1006_v39 = vsel %vm878_vm6, %v805_v33, %v942_v37 }
 0x12b   : > { %1071 = vst.msk [vmem:[%s1520_s5 + $0x1e8] sm:$0xff] %vm1009_vm2, %v1006_v39 }
 0x12c PF: > { %s12_s9 = sadd.s32 1, %s1398_s9  }
 0x12d   : > { %p9_p4 = scmp.ge.s32.totalorder %s12_s9, 6  }
 0x12f   :  { %11 = sbr.rel (!%p9_p4) target bundleno = 1 (0x1), region = 58 }

</bundles_post_ra>
